<compile_context>
chip_gen: v5e
topology: v5e:2x2
jax: 0.10.0
libtpu: 0.0.40
codegen_flags: <defaults>
</compile_context>

<pallas_src>
import numpy as np
import jax
import jax.numpy as jnp
from jax.experimental import pallas as pl
from jax.experimental.pallas import tpu as pltpu


HID1 = 128  # hidden width of both MLP branches (fixed by the module spec)


# ----------------------------------------------------------------------------
# Parameter init (mirrors layer_init: orthogonal weight * gain, zero bias).
# ----------------------------------------------------------------------------
def _orthogonal(key, out_dim, in_dim, gain):
    a = jax.random.normal(key, (max(out_dim, in_dim), min(out_dim, in_dim)),
                          dtype=jnp.float32)
    q, r = jnp.linalg.qr(a)
    q = q * jnp.sign(jnp.diag(r))[None, :]   # sign-correct Q
    if out_dim < in_dim:
        q = q.T
    w = gain * q[:out_dim, :in_dim]          # torch layout: (out, in)
    return w.T                               # our layout:   (in, out)


def init_params(key, hidden_size, actions_size):
    std2 = float(np.sqrt(2.0))
    keys = jax.random.split(key, 5)
    p = {}
    # actor_mean branch: H -> 128 -> tanh -> 128 -> tanh -> A
    p["w1m"] = _orthogonal(keys[0], HID1, hidden_size, std2)
    p["b1m"] = jnp.zeros((1, HID1), jnp.float32)
    p["w2m"] = _orthogonal(keys[1], HID1, HID1, std2)
    p["b2m"] = jnp.zeros((1, HID1), jnp.float32)
    p["w3m"] = _orthogonal(keys[2], actions_size, HID1, 0.01)
    p["b3m"] = jnp.zeros((1, actions_size), jnp.float32)
    # log_std branch: H -> 128 -> tanh -> A
    p["w1s"] = _orthogonal(keys[3], HID1, hidden_size, std2)
    p["b1s"] = jnp.zeros((1, HID1), jnp.float32)
    p["w2s"] = _orthogonal(keys[4], actions_size, HID1, 0.01)
    p["b2s"] = jnp.zeros((1, actions_size), jnp.float32)
    return p


def pack_params(params, compute_dtype=jnp.bfloat16):
    """Pack the 9 per-layer tensors for the kernel.

    Layout:
      w1 [H, 256]    : lanes 0:128 -> mean branch L1, lanes 128:256 -> std L1
      w2 [128, 128]  : mean branch L2
      w3m [128, A]   : mean branch L3   (separate head, no block-diag padding)
      w3s [128, A]   : std  branch L2
    Weights are cast to `compute_dtype` for the MXU; biases stay f32 (added to
    the f32 accumulator).
    """
    cd = compute_dtype
    return {
        "w1": jnp.concatenate([params["w1m"], params["w1s"]], axis=1).astype(cd),
        "b1": jnp.concatenate([params["b1m"], params["b1s"]], axis=1),   # f32
        "w2": params["w2m"].astype(cd),
        "b2": params["b2m"],
        "w3m": params["w3m"].astype(cd),
        "b3m": params["b3m"],
        "w3s": params["w2s"].astype(cd),
        "b3s": params["b2s"],
        "actions_size": int(params["b3m"].shape[-1]),
        "compute_dtype": cd,
    }


# ----------------------------------------------------------------------------
# Pallas kernel: whole two-branch MLP, 4 small MXU matmuls, narrow outputs.
# ----------------------------------------------------------------------------
def _actor_kernel(std_ref,                       # SMEM (1,1) initial_std
                  x_ref,                         # [TB, H]      compute_dtype
                  w1_ref, b1_ref,                # [H,256] cd,  [1,256] f32
                  w2_ref, b2_ref,                # [128,128] cd,[1,128] f32
                  w3m_ref, b3m_ref,              # [128,A] cd,  [1,A]  f32
                  w3s_ref, b3s_ref,              # [128,A] cd,  [1,A]  f32
                  mean_ref, std_out_ref):        # [TB, A] f32 each
    cd = w1_ref.dtype
    x = x_ref[...]

    # Fused first layer of both branches: one K=H, N=256 matmul (shared x).
    h1 = jnp.tanh(
        jnp.dot(x, w1_ref[...], preferred_element_type=jnp.float32)
        + b1_ref[...])                                     # [TB, 256] f32
    h1_mean = h1[:, :HID1].astype(cd)                      # lane-aligned slice
    h1_std = h1[:, HID1:].astype(cd)

    # Second hidden layer of the mean branch.
    h2_mean = jnp.tanh(
        jnp.dot(h1_mean, w2_ref[...], preferred_element_type=jnp.float32)
        + b2_ref[...])                                     # [TB, 128] f32

    # Output heads: two independent K=128 matmuls (no concat, no zero MACs).
    mean = (jnp.dot(h2_mean.astype(cd), w3m_ref[...],
                    preferred_element_type=jnp.float32) + b3m_ref[...])
    logstd = (jnp.dot(h1_std, w3s_ref[...],
                      preferred_element_type=jnp.float32) + b3s_ref[...])

    mean_ref[...] = mean
    std_out_ref[...] = jnp.exp(logstd) * std_ref[0, 0]


def _pick_tile_b(B, max_tile=1024):
    """Batch tile: full block for small B; otherwise a multiple of 256 capped
    at max_tile, aiming for >= 4 grid steps (>= 2 per TC after megacore split)."""
    if B <= 256:
        return B
    target = pl.cdiv(B, 4)
    tb = max(256, (target // 256) * 256)
    return min(tb, max_tile)


def meta_agent_actor_forward(hidden_state, packed, initial_std=1.0,
                             max_tile_b=1024):
    """hidden_state: [B, H] (or tuple, torch-style). Returns (mean, std): [B, A] f32."""
    if isinstance(hidden_state, tuple):
        hidden_state = hidden_state[0]
    cd = packed["compute_dtype"]
    x = jnp.asarray(hidden_state).astype(cd)
    B, H = x.shape
    A = packed["actions_size"]

    tb = _pick_tile_b(B, max_tile_b)
    grid = (pl.cdiv(B, tb),)

    init_std_arr = jnp.full((1, 1), initial_std, jnp.float32)

    smem_spec = pl.BlockSpec((1, 1), lambda i: (0, 0),
                             memory_space=pltpu.MemorySpace.SMEM)
    x_spec = pl.BlockSpec((tb, H), lambda i: (i, 0))
    out_spec = pl.BlockSpec((tb, A), lambda i: (i, 0))

    def _resident(arr):
        # Full-array block, constant index_map -> stays VMEM-resident across steps.
        return pl.BlockSpec(arr.shape, lambda i: (0, 0))

    mean, std = pl.pallas_call(
        _actor_kernel,
        out_shape=(jax.ShapeDtypeStruct((B, A), jnp.float32),
                   jax.ShapeDtypeStruct((B, A), jnp.float32)),
        grid=grid,
        in_specs=[smem_spec, x_spec,
                  _resident(packed["w1"]), _resident(packed["b1"]),
                  _resident(packed["w2"]), _resident(packed["b2"]),
                  _resident(packed["w3m"]), _resident(packed["b3m"]),
                  _resident(packed["w3s"]), _resident(packed["b3s"])],
        out_specs=(out_spec, out_spec),
        compiler_params=pltpu.CompilerParams(
            dimension_semantics=("parallel",)),   # batch axis -> 2 TCs on v7x
    )(init_std_arr, x,
      packed["w1"], packed["b1"], packed["w2"], packed["b2"],
      packed["w3m"], packed["b3m"], packed["w3s"], packed["b3s"])

    return mean, std


# ----------------------------------------------------------------------------
# Pure-JAX reference (unfused, per-layer f32 params) for a sanity check.
# ----------------------------------------------------------------------------
def reference_forward(hidden_state, params, initial_std=1.0):
    x = jnp.asarray(hidden_state, jnp.float32)
    h1 = jnp.tanh(x @ params["w1m"] + params["b1m"])
    h2 = jnp.tanh(h1 @ params["w2m"] + params["b2m"])
    mean = h2 @ params["w3m"] + params["b3m"]
    s1 = jnp.tanh(x @ params["w1s"] + params["b1s"])
    logstd = s1 @ params["w2s"] + params["b2s"]
    return mean, jnp.exp(logstd) * initial_std


if __name__ == "__main__":
    hidden_size = 32
    actions_size = 8
    initial_std = 1.0

    key = jax.random.PRNGKey(0)
    pkey, k1, k2, k3 = jax.random.split(key, 4)
    params = init_params(pkey, hidden_size, actions_size)

    # --- f32 path: exact structural parity with the reference -------------
    packed_f32 = pack_params(params, compute_dtype=jnp.float32)
    x_small = jax.random.normal(k1, (8, hidden_size), jnp.float32)
    mean, std = meta_agent_actor_forward(x_small, packed_f32, initial_std)
    jax.block_until_ready((mean, std))
    ref_mean, ref_std = reference_forward(x_small, params, initial_std)
    np.testing.assert_allclose(np.asarray(mean), np.asarray(ref_mean),
                               rtol=1e-5, atol=1e-5)
    np.testing.assert_allclose(np.asarray(std), np.asarray(ref_std),
                               rtol=1e-5, atol=1e-5)

    # --- bf16 path, partial last tile (B not a multiple of tile or of 8) ---
    packed_bf16 = pack_params(params, compute_dtype=jnp.bfloat16)
    x_odd = jax.random.normal(k2, (300, hidden_size), jnp.float32)
    mean_o, std_o = meta_agent_actor_forward(x_odd, packed_bf16, initial_std)
    jax.block_until_ready((mean_o, std_o))
    ref_mean_o, ref_std_o = reference_forward(x_odd, params, initial_std)
    np.testing.assert_allclose(np.asarray(mean_o), np.asarray(ref_mean_o),
                               rtol=5e-2, atol=1e-2)
    np.testing.assert_allclose(np.asarray(std_o), np.asarray(ref_std_o),
                               rtol=5e-2, atol=1e-2)

    # --- bf16 path, larger batch exercising the pipelined batch grid -------
    x_big = jax.random.normal(k3, (1024, hidden_size), jnp.float32)
    mean_b, std_b = meta_agent_actor_forward(x_big, packed_bf16, initial_std)
    jax.block_until_ready((mean_b, std_b))
    ref_mean_b, ref_std_b = reference_forward(x_big, params, initial_std)
    np.testing.assert_allclose(np.asarray(mean_b), np.asarray(ref_mean_b),
                               rtol=5e-2, atol=1e-2)
    np.testing.assert_allclose(np.asarray(std_b), np.asarray(ref_std_b),
                               rtol=5e-2, atol=1e-2)

    print("KERNEL_OK")
</pallas_src>

<mosaic_0001>
module attributes {stable_mosaic.version = 11 : i64} {
  func.func @_actor_kernel(%arg0: i32, %arg1: memref<1x1xf32, #tpu.memory_space<smem>>, %arg2: memref<8x32xf32, #tpu.memory_space<vmem>>, %arg3: memref<32x256xf32, #tpu.memory_space<vmem>>, %arg4: memref<1x256xf32, #tpu.memory_space<vmem>>, %arg5: memref<128x128xf32, #tpu.memory_space<vmem>>, %arg6: memref<1x128xf32, #tpu.memory_space<vmem>>, %arg7: memref<128x8xf32, #tpu.memory_space<vmem>>, %arg8: memref<1x8xf32, #tpu.memory_space<vmem>>, %arg9: memref<128x8xf32, #tpu.memory_space<vmem>>, %arg10: memref<1x8xf32, #tpu.memory_space<vmem>>, %arg11: memref<8x8xf32, #tpu.memory_space<vmem>>, %arg12: memref<8x8xf32, #tpu.memory_space<vmem>>) attributes {dimension_semantics = [#tpu.dimension_semantics<parallel>], iteration_bounds = array<i64: 1>, scalar_prefetch = 0 : i64, scratch_operands = 0 : i64, tpu.core_type = #tpu.core_type<tc>, window_params = [{transform_indices = @transform_0, window_bounds = array<i64: 1, 1>}, {transform_indices = @transform_1, window_bounds = array<i64: 8, 32>}, {pipeline_mode = #tpu.pipeline_mode<synchronous>, transform_indices = @transform_2, window_bounds = array<i64: 32, 256>}, {pipeline_mode = #tpu.pipeline_mode<synchronous>, transform_indices = @transform_3, window_bounds = array<i64: 1, 256>}, {pipeline_mode = #tpu.pipeline_mode<synchronous>, transform_indices = @transform_4, window_bounds = array<i64: 128, 128>}, {pipeline_mode = #tpu.pipeline_mode<synchronous>, transform_indices = @transform_5, window_bounds = array<i64: 1, 128>}, {pipeline_mode = #tpu.pipeline_mode<synchronous>, transform_indices = @transform_6, window_bounds = array<i64: 128, 8>}, {pipeline_mode = #tpu.pipeline_mode<synchronous>, transform_indices = @transform_7, window_bounds = array<i64: 1, 8>}, {pipeline_mode = #tpu.pipeline_mode<synchronous>, transform_indices = @transform_8, window_bounds = array<i64: 128, 8>}, {pipeline_mode = #tpu.pipeline_mode<synchronous>, transform_indices = @transform_9, window_bounds = array<i64: 1, 8>}, {transform_indices = @transform_10, window_bounds = array<i64: 8, 8>}, {transform_indices = @transform_11, window_bounds = array<i64: 8, 8>}]} {
    %c0 = arith.constant 0 : index
    %c0_0 = arith.constant 0 : index
    %0 = vector.load %arg2[%c0, %c0_0] : memref<8x32xf32, #tpu.memory_space<vmem>>, vector<8x32xf32>
    %c0_1 = arith.constant 0 : index
    %c0_2 = arith.constant 0 : index
    %1 = vector.load %arg3[%c0_1, %c0_2] : memref<32x256xf32, #tpu.memory_space<vmem>>, vector<32x256xf32>
    %cst = arith.constant dense<0.000000e+00> : vector<8x256xf32>
    %2 = tpu.matmul %0, %1, %cst {dimension_numbers = #tpu.dot_dimension_numbers<[1], [0], [0], [1], [0, 0, 1, 1], [], []>} : vector<8x32xf32>, vector<32x256xf32>, vector<8x256xf32> -> vector<8x256xf32>
    %c0_3 = arith.constant 0 : index
    %c0_4 = arith.constant 0 : index
    %3 = vector.load %arg4[%c0_3, %c0_4] : memref<1x256xf32, #tpu.memory_space<vmem>>, vector<1x256xf32>
    %4 = vector.broadcast %3 : vector<1x256xf32> to vector<8x256xf32>
    %5 = arith.addf %2, %4 : vector<8x256xf32>
    %6 = math.tanh %5 : vector<8x256xf32>
    %7 = vector.extract_strided_slice %6 {offsets = [0, 0], sizes = [8, 128], strides = [1, 1]} : vector<8x256xf32> to vector<8x128xf32>
    %8 = vector.extract_strided_slice %6 {offsets = [0, 128], sizes = [8, 128], strides = [1, 1]} : vector<8x256xf32> to vector<8x128xf32>
    %c0_5 = arith.constant 0 : index
    %c0_6 = arith.constant 0 : index
    %9 = vector.load %arg5[%c0_5, %c0_6] : memref<128x128xf32, #tpu.memory_space<vmem>>, vector<128x128xf32>
    %cst_7 = arith.constant dense<0.000000e+00> : vector<8x128xf32>
    %10 = tpu.matmul %7, %9, %cst_7 {dimension_numbers = #tpu.dot_dimension_numbers<[1], [0], [0], [1], [0, 0, 1, 1], [], []>} : vector<8x128xf32>, vector<128x128xf32>, vector<8x128xf32> -> vector<8x128xf32>
    %c0_8 = arith.constant 0 : index
    %c0_9 = arith.constant 0 : index
    %11 = vector.load %arg6[%c0_8, %c0_9] : memref<1x128xf32, #tpu.memory_space<vmem>>, vector<1x128xf32>
    %12 = vector.broadcast %11 : vector<1x128xf32> to vector<8x128xf32>
    %13 = arith.addf %10, %12 : vector<8x128xf32>
    %14 = math.tanh %13 : vector<8x128xf32>
    %c0_10 = arith.constant 0 : index
    %c0_11 = arith.constant 0 : index
    %15 = vector.load %arg7[%c0_10, %c0_11] : memref<128x8xf32, #tpu.memory_space<vmem>>, vector<128x8xf32>
    %cst_12 = arith.constant dense<0.000000e+00> : vector<8x8xf32>
    %16 = tpu.matmul %14, %15, %cst_12 {dimension_numbers = #tpu.dot_dimension_numbers<[1], [0], [0], [1], [0, 0, 1, 1], [], []>} : vector<8x128xf32>, vector<128x8xf32>, vector<8x8xf32> -> vector<8x8xf32>
    %c0_13 = arith.constant 0 : index
    %c0_14 = arith.constant 0 : index
    %17 = vector.load %arg8[%c0_13, %c0_14] : memref<1x8xf32, #tpu.memory_space<vmem>>, vector<1x8xf32>
    %18 = vector.broadcast %17 : vector<1x8xf32> to vector<8x8xf32>
    %19 = arith.addf %16, %18 : vector<8x8xf32>
    %c0_15 = arith.constant 0 : index
    %c0_16 = arith.constant 0 : index
    %20 = vector.load %arg9[%c0_15, %c0_16] : memref<128x8xf32, #tpu.memory_space<vmem>>, vector<128x8xf32>
    %cst_17 = arith.constant dense<0.000000e+00> : vector<8x8xf32>
    %21 = tpu.matmul %8, %20, %cst_17 {dimension_numbers = #tpu.dot_dimension_numbers<[1], [0], [0], [1], [0, 0, 1, 1], [], []>} : vector<8x128xf32>, vector<128x8xf32>, vector<8x8xf32> -> vector<8x8xf32>
    %c0_18 = arith.constant 0 : index
    %c0_19 = arith.constant 0 : index
    %22 = vector.load %arg10[%c0_18, %c0_19] : memref<1x8xf32, #tpu.memory_space<vmem>>, vector<1x8xf32>
    %23 = vector.broadcast %22 : vector<1x8xf32> to vector<8x8xf32>
    %24 = arith.addf %21, %23 : vector<8x8xf32>
    %c0_20 = arith.constant 0 : index
    %c0_21 = arith.constant 0 : index
    %25 = vector.load %arg11[%c0_20, %c0_21] : memref<8x8xf32, #tpu.memory_space<vmem>>, vector<8x8xf32>
    tpu.vector_store %arg11[%c0_20, %c0_21], %19 {strides = array<i32>} : memref<8x8xf32, #tpu.memory_space<vmem>>, vector<8x8xf32>,
    %26 = math.exp %24 : vector<8x8xf32>
    %c0_22 = arith.constant 0 : index
    %c0_23 = arith.constant 0 : index
    %27 = memref.load %arg1[%c0_22, %c0_23] : memref<1x1xf32, #tpu.memory_space<smem>>
    %28 = vector.broadcast %27 : f32 to vector<8x8xf32>
    %29 = arith.mulf %26, %28 : vector<8x8xf32>
    %c0_24 = arith.constant 0 : index
    %c0_25 = arith.constant 0 : index
    %30 = vector.load %arg12[%c0_24, %c0_25] : memref<8x8xf32, #tpu.memory_space<vmem>>, vector<8x8xf32>
    tpu.vector_store %arg12[%c0_24, %c0_25], %29 {strides = array<i32>} : memref<8x8xf32, #tpu.memory_space<vmem>>, vector<8x8xf32>,
    return
  }
  func.func @transform_0(%arg0: i32) -> (i32, i32) {
    %c0_i32 = arith.constant 0 : i32
    %c0_i32_0 = arith.constant 0 : i32
    %c0_i32_1 = arith.constant 0 : i32
    return %c0_i32, %c0_i32_0 : i32, i32
  }
  func.func @transform_1(%arg0: i32) -> (i32, i32) {
    %c0_i32 = arith.constant 0 : i32
    %c0_i32_0 = arith.constant 0 : i32
    return %arg0, %c0_i32 : i32, i32
  }
  func.func @transform_2(%arg0: i32) -> (i32, i32) {
    %c0_i32 = arith.constant 0 : i32
    %c0_i32_0 = arith.constant 0 : i32
    %c0_i32_1 = arith.constant 0 : i32
    return %c0_i32, %c0_i32_0 : i32, i32
  }
  func.func @transform_3(%arg0: i32) -> (i32, i32) {
    %c0_i32 = arith.constant 0 : i32
    %c0_i32_0 = arith.constant 0 : i32
    %c0_i32_1 = arith.constant 0 : i32
    return %c0_i32, %c0_i32_0 : i32, i32
  }
  func.func @transform_4(%arg0: i32) -> (i32, i32) {
    %c0_i32 = arith.constant 0 : i32
    %c0_i32_0 = arith.constant 0 : i32
    %c0_i32_1 = arith.constant 0 : i32
    return %c0_i32, %c0_i32_0 : i32, i32
  }
  func.func @transform_5(%arg0: i32) -> (i32, i32) {
    %c0_i32 = arith.constant 0 : i32
    %c0_i32_0 = arith.constant 0 : i32
    %c0_i32_1 = arith.constant 0 : i32
    return %c0_i32, %c0_i32_0 : i32, i32
  }
  func.func @transform_6(%arg0: i32) -> (i32, i32) {
    %c0_i32 = arith.constant 0 : i32
    %c0_i32_0 = arith.constant 0 : i32
    %c0_i32_1 = arith.constant 0 : i32
    return %c0_i32, %c0_i32_0 : i32, i32
  }
  func.func @transform_7(%arg0: i32) -> (i32, i32) {
    %c0_i32 = arith.constant 0 : i32
    %c0_i32_0 = arith.constant 0 : i32
    %c0_i32_1 = arith.constant 0 : i32
    return %c0_i32, %c0_i32_0 : i32, i32
  }
  func.func @transform_8(%arg0: i32) -> (i32, i32) {
    %c0_i32 = arith.constant 0 : i32
    %c0_i32_0 = arith.constant 0 : i32
    %c0_i32_1 = arith.constant 0 : i32
    return %c0_i32, %c0_i32_0 : i32, i32
  }
  func.func @transform_9(%arg0: i32) -> (i32, i32) {
    %c0_i32 = arith.constant 0 : i32
    %c0_i32_0 = arith.constant 0 : i32
    %c0_i32_1 = arith.constant 0 : i32
    return %c0_i32, %c0_i32_0 : i32, i32
  }
  func.func @transform_10(%arg0: i32) -> (i32, i32) {
    %c0_i32 = arith.constant 0 : i32
    %c0_i32_0 = arith.constant 0 : i32
    return %arg0, %c0_i32 : i32, i32
  }
  func.func @transform_11(%arg0: i32) -> (i32, i32) {
    %c0_i32 = arith.constant 0 : i32
    %c0_i32_0 = arith.constant 0 : i32
    return %arg0, %c0_i32 : i32, i32
  }
}

</mosaic_0001>

<bundles_post_ra>
// kernel: tpu_custom_call.1
= control target key start
LH: loop header
LB: loop body
LE: loop exit
PB: predicated region body
PF: predicated region fallthrough
CT: control target
= control target key end

     0   :  { %18 = vsyncpa [#allocation4], 0  ;;  %vm55_vm0 = vcmask 261120   ;;  %s585_s0 = inlined_call_operand.<no memory space> [shape: f32[1,1], index: 0, kind: input, shape index: {}]   ;;  %s586_s1 = inlined_call_operand.vmem [shape: f32[8,32], index: 1, kind: input, shape index: {}]   ;;  %s587_s2 = inlined_call_operand.vmem [shape: f32[32,256], index: 2, kind: input, shape index: {}]   ;;  %s588_s3 = inlined_call_operand.vmem [shape: f32[1,256], index: 3, kind: input, shape index: {}]   ;;  %s589_s4 = inlined_call_operand.vmem [shape: f32[128,128], index: 4, kind: input, shape index: {}]   ;;  %s590_s5 = inlined_call_operand.vmem [shape: f32[1,128], index: 5, kind: input, shape index: {}]   ;;  %s591_s6 = inlined_call_operand.vmem [shape: f32[128,8], index: 6, kind: input, shape index: {}]   ;;  %s592_s7 = inlined_call_operand.vmem [shape: f32[1,8], index: 7, kind: input, shape index: {}]   ;;  %s593_s8 = inlined_call_operand.vmem [shape: f32[128,8], index: 8, kind: input, shape index: {}]   ;;  %s594_s9 = inlined_call_operand.vmem [shape: f32[1,8], index: 9, kind: input, shape index: {}]   ;;  %s595_s10 = inlined_call_operand.hbm [shape: f32[8,8], index: 10, kind: output, shape index: {0}]   ;;  %s596_s11 = inlined_call_operand.hbm [shape: f32[8,8], index: 11, kind: output, shape index: {1}]  }
   0x1   :  { %v47_v0 = vld [vmem:[%s587_s2 + $0x30] sm:$0xff]  ;;  %v45_v1 = vld [vmem:[%s587_s2 + $0x20] sm:$0xff]  ;;  %v116_v2 = vld [vmem:[%s589_s4 + $0x78] sm:$0xff] }
   0x2   :  { %71 = vmatpush.msra.mxu1 %v47_v0  ;;  %v43_v3 = vld [vmem:[%s587_s2 + $0x10] sm:$0xff]  ;;  %121 = vmatpush.msra.mxu2 %v116_v2  ;;  %v114_v5 = vld [vmem:[%s589_s4 + $0x68] sm:$0xff]  ;;  %v41_v6 = vld [vmem:[%s587_s2] sm:$0xff] }
   0x3   :  { %v115_v4 = vld [vmem:[%s589_s4 + $0x70] sm:$0xff]  ;;  %v40_v7 = vld [vmem:[%s586_s1] sm:$0xff]  ;;  %v112_v9 = vld [vmem:[%s589_s4 + $0x58] sm:$0xff] }
   0x4   :  { %72 = vmatpush.msra.mxu1 %v45_v1  ;;  %122 = vmatpush.msra.mxu2 %v115_v4  ;;  %v113_v8 = vld [vmem:[%s589_s4 + $0x60] sm:$0xff] }
   0x6   :  { %73 = vmatpush.msra.mxu1 %v43_v3  ;;  %123 = vmatpush.msra.mxu2 %v114_v5 }
   0x8   :  { %74 = vmatpush.msra.mxu1 %v41_v6 }
   0x9   :  { %19 = vsyncpa [#allocation6], 0  ;;  %262 = vmatmul.msk.f32.vlgmr.msra.gmra.mxu1 %vm55_vm0, %v40_v7  ;;  %124 = vmatpush.msra.mxu2 %v113_v8  ;;  %v111_v10 = vld [vmem:[%s589_s4 + $0x50] sm:$0xff]  ;;  %v110_v11 = vld [vmem:[%s589_s4 + $0x48] sm:$0xff]  ;;  %vm222_vm1 = vcmask 64512  }
   0xa   :  { %v109_v12 = vld [vmem:[%s589_s4 + $0x40] sm:$0xff]  ;;  %v108_v13 = vld [vmem:[%s589_s4 + $0x38] sm:$0xff]  ;;  %v107_v14 = vld [vmem:[%s589_s4 + $0x30] sm:$0xff] }
   0xb   :  { %125 = vmatpush.msra.mxu2 %v112_v9  ;;  %v106_v15 = vld [vmem:[%s589_s4 + $0x28] sm:$0xff]  ;;  %v105_v16 = vld [vmem:[%s589_s4 + $0x20] sm:$0xff]  ;;  %v104_v17 = vld [vmem:[%s589_s4 + $0x18] sm:$0xff] }
   0xc   :  { %v48_v18 = vld [vmem:[%s587_s2 + $0x38] sm:$0xff]  ;;  %v46_v19 = vld [vmem:[%s587_s2 + $0x28] sm:$0xff]  ;;  %v103_v20 = vld [vmem:[%s589_s4 + $0x10] sm:$0xff] }
   0xd   :  { %126 = vmatpush.msra.mxu2 %v111_v10  ;;  %91 = vmatpush.msrb.mxu1 %v48_v18  ;;  %v102_v21 = vld [vmem:[%s589_s4 + $0x8] sm:$0xff]  ;;  %v44_v22 = vld [vmem:[%s587_s2 + $0x18] sm:$0xff]  ;;  %v101_v23 = vld [vmem:[%s589_s4] sm:$0xff]  ;;  %s248_s4 = sshll.u32 %s596_s11, 4  ;;  %s237_s11 = sshll.u32 %s595_s10, 4  ;;  %s249_s4 = int_to_ptr.hbm [resolvable:$true] %s248_s4  ;;  %s238_s11 = int_to_ptr.hbm [resolvable:$true] %s237_s11 }
   0xe   :  { %v42_v24 = vld [vmem:[%s587_s2 + $0x8] sm:$0xff]  ;;  %v197_v25 = vld [vmem:[%s593_s8 + $0x78] sm:$0xff]  ;;  %v196_v26 = vld [vmem:[%s593_s8 + $0x70] sm:$0xff]  ;;  %s330_s2 = smov [#allocation3]  }
   0xf   :  { %127 = vmatpush.msra.mxu2 %v110_v11  ;;  %92 = vmatpush.msrb.mxu1 %v46_v19  ;;  %v157_v27 = vld [vmem:[%s591_s6 + $0x78] sm:$0xff]  ;;  %v156_v28 = vld [vmem:[%s591_s6 + $0x70] sm:$0xff]  ;;  %v195_v29 = vld [vmem:[%s593_s8 + $0x68] sm:$0xff]  ;;  %v227_v11 = vstv %s585_s0  ;;  %s235_s14 = sshll.u32 %s330_s2, 4  ;;  %s236_s14 = int_to_ptr.vmem [resolvable:$true] %s235_s14 }
  0x10   :  { %202 = vmatpush.msra.mxu0 %v197_v25  ;;  %162 = vmatpush.msra.mxu3 %v157_v27  ;;  %v155_v30 = vld [vmem:[%s591_s6 + $0x68] sm:$0xff]  ;;  %v194_v31 = vld [vmem:[%s593_s8 + $0x60] sm:$0xff]  ;;  %v193_v33 = vld [vmem:[%s593_s8 + $0x58] sm:$0xff] }
  0x11   :  { %128 = vmatpush.msra.mxu2 %v109_v12  ;;  %93 = vmatpush.msrb.mxu1 %v44_v22  ;;  %v154_v32 = vld [vmem:[%s591_s6 + $0x60] sm:$0xff]  ;;  %v153_v34 = vld [vmem:[%s591_s6 + $0x58] sm:$0xff]  ;;  %v192_v35 = vld [vmem:[%s593_s8 + $0x50] sm:$0xff] }
  0x12   :  { %203 = vmatpush.msra.mxu0 %v196_v26  ;;  %163 = vmatpush.msra.mxu3 %v156_v28  ;;  %v152_v36 = vld [vmem:[%s591_s6 + $0x50] sm:$0xff]  ;;  %v191_v37 = vld [vmem:[%s593_s8 + $0x48] sm:$0xff]  ;;  %v190_v39 = vld [vmem:[%s593_s8 + $0x40] sm:$0xff] }
  0x13   :  { %129 = vmatpush.msra.mxu2 %v108_v13  ;;  %94 = vmatpush.msrb.mxu1 %v42_v24  ;;  %v151_v38 = vld [vmem:[%s591_s6 + $0x48] sm:$0xff]  ;;  %v150_v40 = vld [vmem:[%s591_s6 + $0x40] sm:$0xff]  ;;  %v189_v41 = vld [vmem:[%s593_s8 + $0x38] sm:$0xff] }
  0x14   :  { %263 = vmatmul.msk.f32.vlgmr.msrb.gmra.mxu1 %vm55_vm0, %v40_v7  ;;  %204 = vmatpush.msra.mxu0 %v195_v29  ;;  %v49_v42 = vld [vmem:[%s588_s3] sm:$0x3]  ;;  %v188_v43 = vld [vmem:[%s593_s8 + $0x30] sm:$0xff]  ;;  %v187_v44 = vld [vmem:[%s593_s8 + $0x28] sm:$0xff] }
  0x15   :  { %130 = vmatpush.msra.mxu2 %v107_v14  ;;  %164 = vmatpush.msra.mxu3 %v155_v30  ;;  %v51_v45 = vperm.slane %v49_v42, 0  ;;  %v149_v49 = vld [vmem:[%s591_s6 + $0x38] sm:$0xff]  ;;  %v186_v50 = vld [vmem:[%s593_s8 + $0x20] sm:$0xff]  ;;  %v148_v51 = vld [vmem:[%s591_s6 + $0x30] sm:$0xff]  ;;  %v52_v54 = vperm.slane %v49_v42, 1 }
  0x16   :  { %205 = vmatpush.msra.mxu0 %v194_v31  ;;  %v185_v52 = vld [vmem:[%s593_s8 + $0x18] sm:$0xff]  ;;  %v147_v53 = vld [vmem:[%s591_s6 + $0x28] sm:$0xff]  ;;  %v184_v57 = vld [vmem:[%s593_s8 + $0x10] sm:$0xff] }
  0x17   :  { %131 = vmatpush.msra.mxu2 %v106_v15  ;;  %165 = vmatpush.msra.mxu3 %v154_v32  ;;  %v146_v58 = vld [vmem:[%s591_s6 + $0x20] sm:$0xff]  ;;  %v183_v59 = vld [vmem:[%s593_s8 + $0x8] sm:$0xff]  ;;  %v145_v60 = vld [vmem:[%s591_s6 + $0x18] sm:$0xff] }
  0x18   :  { %206 = vmatpush.msra.mxu0 %v193_v33  ;;  %v182_v61 = vld [vmem:[%s593_s8] sm:$0xff]  ;;  %v144_v62 = vld [vmem:[%s591_s6 + $0x10] sm:$0xff]  ;;  %v143_v0 = vld [vmem:[%s591_s6 + $0x8] sm:$0xff] }
  0x19   :  { %132 = vmatpush.msra.mxu2 %v105_v16  ;;  %166 = vmatpush.msra.mxu3 %v153_v34  ;;  %v142_v1 = vld [vmem:[%s591_s6] sm:$0xff]  ;;  %s329_s6 = smov [#allocation5]  }
  0x1a   :  { %207 = vmatpush.msra.mxu0 %v192_v35  ;;  %v266_v2 = vld [vmem:[%s590_s5] ss:$0 sm:$0xff]  ;;  %s246_s28 = sshll.u32 %s329_s6, 4  ;;  %s247_s28 = int_to_ptr.vmem [resolvable:$true] %s246_s28 }
  0x1b   :  { %133 = vmatpush.msra.mxu2 %v104_v17  ;;  %167 = vmatpush.msra.mxu3 %v152_v36  ;;  %v267_v6 = vld [vmem:[%s594_s9] ss:$0 sm:$0xff] }
  0x1c   :  { %208 = vmatpush.msra.mxu0 %v191_v37  ;;  %v268_v13 = vld [vmem:[%s592_s7] ss:$0 sm:$0xff] }
  0x1d   :  { %134 = vmatpush.msra.mxu2 %v103_v20  ;;  %168 = vmatpush.msra.mxu3 %v151_v38 }
  0x1e   :  { %209 = vmatpush.msra.mxu0 %v190_v39 }
  0x1f   :  { %135 = vmatpush.msra.mxu2 %v102_v21  ;;  %169 = vmatpush.msra.mxu3 %v150_v40 }
  0x20   :  { %210 = vmatpush.msra.mxu0 %v189_v41 }
  0x21   :  { %136 = vmatpush.msra.mxu2 %v101_v23  ;;  %170 = vmatpush.msra.mxu3 %v149_v49 }
  0x22   :  { %211 = vmatpush.msra.mxu0 %v188_v43 }
  0x23   :  { %171 = vmatpush.msra.mxu3 %v148_v51 }
  0x24   :  { %212 = vmatpush.msra.mxu0 %v187_v44 }
  0x25   :  { %172 = vmatpush.msra.mxu3 %v147_v53 }
  0x26   :  { %213 = vmatpush.msra.mxu0 %v186_v50 }
  0x27   :  { %173 = vmatpush.msra.mxu3 %v146_v58 }
  0x28   :  { %214 = vmatpush.msra.mxu0 %v185_v52 }
  0x29   :  { %174 = vmatpush.msra.mxu3 %v145_v60 }
  0x2a   :  { %215 = vmatpush.msra.mxu0 %v184_v57 }
  0x2b   :  { %175 = vmatpush.msra.mxu3 %v144_v62 }
  0x2c   :  { %216 = vmatpush.msra.mxu0 %v183_v59 }
  0x2d   :  { %176 = vmatpush.msra.mxu3 %v143_v0 }
  0x2e   :  { %217 = vmatpush.msra.mxu0 %v182_v61 }
  0x2f   :  { %177 = vmatpush.msra.mxu3 %v142_v1 }
  0x86   :  { %v76_v46 = vpop.f32.mrf.mxu1 }
  0x87   :  { %v77_v47 = vadd.f32 %v76_v46, %v51_v45 }
  0x89   :  { %269 = vtanh.f32 %v77_v47 }
  0x8f   :  { %v270_v48 = vpop.eup %269 }
  0x90   :  { %137 = vmatmul.f32.vlgmr.msra.gmra.mxu2 %v270_v48 }
  0x91   :  { %v96_v55 = vpop.f32.mrf.mxu1 }
  0x92   :  { %v97_v56 = vadd.f32 %v96_v55, %v52_v54 }
  0x94   :  { %271 = vtanh.f32 %v97_v56 }
  0x9a   :  { %v272_v63 = vpop.eup %271 }
  0x9b   :  { %218 = vmatmul.f32.vlgmr.msra.gmra.mxu0 %v272_v63 }
 0x113   :  { %v138_v3 = vpop.f32.mrf.mxu2 }
 0x114   :  { %v139_v4 = vadd.f32 %v266_v2, %v138_v3 }
 0x116   :  { %273 = vtanh.f32 %v139_v4 }
 0x118   :  { %v219_v7 = vpop.f32.mrf.mxu0 }
 0x119   :  { %v220_v8 = vadd.f32 %v267_v6, %v219_v7 }
 0x11b   :  { %v224_v9 = vmul.f32 1.442695, %v220_v8 }
 0x11c   :  { %v274_v5 = vpop.eup %273 }
 0x11d   :  { %178 = vmatmul.f32.vlgmr.msra.gmra.mxu3 %v274_v5  ;;  %275 = vpow2.f32 %v224_v9 }
 0x123   :  { %v276_v10 = vpop.eup %275 }
 0x124   :  { %v228_v12 = vmul.f32 %v276_v10, %v227_v11 }
 0x126   :  { %229 = vst.msk [vmem:[#allocation5] sm:$0xff] %vm222_vm1, %v228_v12 }
 0x127   :  { %251 = dma.vmem_to_hbm [thread:$0]  %s247_s28, 128, %s249_s4, [#allocation6]  }
 0x1a0   :  { %v179_v14 = vpop.f32.mrf.mxu3 }
 0x1a1   :  { %v180_v15 = vadd.f32 %v268_v13, %v179_v14 }
 0x1a3   :  { %223 = vst.msk [vmem:[#allocation3] sm:$0xff] %vm222_vm1, %v180_v15 }
 0x1a4   :  { %240 = dma.vmem_to_hbm [thread:$0]  %s236_s14, 128, %s238_s11, [#allocation4]  }
 0x1a5   :  { %325 = dma.done.wait [#allocation4], 128  }
 0x1a6   :  { %326 = vsyncadd [#allocation4], 4294967168 }
 0x1a7   :  { %327 = dma.done.wait [#allocation6], 128  }
 0x1a8   :  { %328 = vsyncadd [#allocation6], 4294967168 }
 0x1a9   :  { %260 = vsyncpa [#allocation4], 1 }
 0x1aa   :  { %261 = vsyncpa [#allocation6], 1 }

</bundles_post_ra>
